<compile_context>
chip_gen: v6e
topology: v6e:2x2x1
jax: 0.10.0
libtpu: 0.0.40
codegen_flags: <defaults>
</compile_context>

<pallas_src>
import functools

import jax
import jax.numpy as jnp
from jax.experimental import pallas as pl
from jax.experimental.pallas import tpu as pltpu

EPS = 1e-5
_TAPS = tuple((dh, dw) for dh in (-1, 0, 1) for dw in (-1, 0, 1))
_CONV_ORDER = ('lr_aa', 'lr_ab', 'lr_bb', 'rl_bb', 'rl_ba', 'rl_aa')
_VMEM_LIMIT = 48 * 1024 * 1024       # <= ~48 MiB: safe on v7x's 64 MiB VMEM


# ----------------------------------------------------------------------------
# pltpu.roll direction probe (roll follows jnp.roll semantics; probed once so a
# convention difference can never silently flip the 3x3 taps).
# ----------------------------------------------------------------------------
@functools.lru_cache(maxsize=1)
def _roll_is_jnp_like():
    def k(x_ref, o_ref):
        o_ref[...] = pltpu.roll(x_ref[...], 1, axis=1)
    x = jnp.tile(jnp.arange(128, dtype=jnp.float32)[None, :], (8, 1))
    y = pl.pallas_call(k, out_shape=jax.ShapeDtypeStruct((8, 128), jnp.float32))(x)
    return bool(y[0, 0] == 127.0)     # jnp.roll(x, 1): result[0] == x[-1]


# ----------------------------------------------------------------------------
# Host-side helpers: boundary masks, lane-dense layout, NB heuristic, weights
# ----------------------------------------------------------------------------
def _tap_masks(H, W, NB):
    """(9, L) f32 masks zeroing every lane where a rolled 3x3 tap would wrap
    across an image edge (or bleed into the neighbouring image for NB > 1)."""
    L = NB * H * W
    pos = jnp.arange(L, dtype=jnp.int32)
    col = pos % W
    row = (pos // W) % H
    rows = []
    for dh, dw in _TAPS:
        m = jnp.ones((L,), jnp.bool_)
        if dh == -1:
            m = m & (row != 0)
        if dh == 1:
            m = m & (row != H - 1)
        if dw == -1:
            m = m & (col != 0)
        if dw == 1:
            m = m & (col != W - 1)
        rows.append(m)
    return jnp.stack(rows, axis=0).astype(jnp.float32)


def _to_lane_dense(x, NB):
    N, C, H, W = x.shape
    G = N // NB
    return (x.reshape(G, NB, C, H, W)
             .transpose(0, 2, 1, 3, 4)
             .reshape(G, C, NB * H * W))


def _from_lane_dense(y, NB, H, W):
    G, C, _ = y.shape
    return (y.reshape(G, C, NB, H, W)
             .transpose(0, 2, 1, 3, 4)
             .reshape(G * NB, C, H, W))


def _pick_images_per_step(N, H, W, *, target_lanes=2048, max_lanes=8192,
                          min_grid=2):
    """Pack NB images onto the lane axis: aim for L = NB*H*W >= ~2048 (HBM
    roofline / unmasked vst), keep >= min_grid grid steps when the batch allows
    it (v7x has two TensorCores) and cap L to bound the VMEM footprint."""
    # TODO(synk): for very large H*W, add an H-tile (with halo) to the grid
    # instead of always taking a whole image per step.
    hw = H * W
    cands = [d for d in range(1, N + 1) if N % d == 0 and d * hw <= max_lanes]
    if not cands:
        return 1
    pref = [d for d in cands if N // d >= min_grid] or cands
    for d in pref:                     # smallest NB that reaches the target
        if d * hw >= target_lanes:
            return d
    return pref[-1]                    # otherwise the largest NB available


def _prep_conv_weights(w, bias):
    """(groups, CoutG, CinG, 3, 3) -> (groups, CoutG, 9*CinG) bf16 with a
    tap-major K order matching the in-kernel im2col slab, plus (Cout, 1) f32."""
    groups, cog, cig = w.shape[0], w.shape[1], w.shape[2]
    wk = (jnp.transpose(w, (0, 1, 3, 4, 2))
             .reshape(groups, cog, 9 * cig)
             .astype(jnp.bfloat16))
    bk = bias.reshape(groups * cog, 1).astype(jnp.float32)
    return wk, bk


# ----------------------------------------------------------------------------
# Pallas kernel: a whole run of stride-1 CycleConvBlocks for one batch chunk
# ----------------------------------------------------------------------------
def _make_seq_kernel(H, W, NB, num_blocks, roll_like_jnp):
    """refs = [masks(9,L), xa(C0,L), xb(C0,L), (w,b) x 6 convs x num_blocks,
    oa, ob].  Activations live in VMEM/vregs as (C, L) f32; every conv is one
    bf16 MXU dot per group with an f32 accumulator."""
    L = NB * H * W

    def kernel(*refs):
        masks_ref, xa_ref, xb_ref = refs[0], refs[1], refs[2]
        w_refs = refs[3:-2]
        oa_ref, ob_ref = refs[-2], refs[-1]
        masks = masks_ref[...]                        # (9, L) f32, resident

        def make_taps(x):
            # x: (C, L) f32 -> 9 lane-shifted, edge-masked bf16 tap copies.
            taps = []
            for t, (dh, dw) in enumerate(_TAPS):
                d = dh * W + dw
                if d == 0:
                    xs = x
                else:
                    shift = (-d) % L if roll_like_jnp else d % L
                    xs = pltpu.roll(x, shift, axis=1)     # XLU, masks kill wraps
                    xs = xs * masks[t:t + 1, :]
                taps.append(xs.astype(jnp.bfloat16))
            return taps

        def conv(taps, w_ref, b_ref, residual=None, relu=True):
            w = w_ref[...]                            # (G, CoutG, 9*CinG) bf16
            groups, _, k = w.shape
            cig = k // 9
            outs = []
            for g in range(groups):                   # no densified groups
                if groups == 1:
                    slab = jnp.concatenate(taps, axis=0)
                else:
                    slab = jnp.concatenate(
                        [t_[g * cig:(g + 1) * cig] for t_ in taps], axis=0)
                outs.append(jnp.dot(w[g], slab,
                                    preferred_element_type=jnp.float32))
            acc = outs[0] if groups == 1 else jnp.concatenate(outs, axis=0)
            out = acc + b_ref[...]                    # f32 bias / residual / relu
            if residual is not None:
                out = out + residual
            if relu:
                out = jnp.maximum(out, 0.0)
            return out

        xa = xa_ref[...].astype(jnp.float32)
        xb = xb_ref[...].astype(jnp.float32)
        for b in range(num_blocks):                   # stride == 1 dataflow
            base = 12 * b
            wb = {name: (w_refs[base + 2 * i], w_refs[base + 2 * i + 1])
                  for i, name in enumerate(_CONV_ORDER)}
            ta = make_taps(xa)
            ya = conv(ta, *wb['lr_aa'], relu=True)
            tya = make_taps(ya)                       # shared by lr_ab and rl_aa
            t_ab = conv(tya, *wb['lr_ab'], relu=False)
            yb = conv(make_taps(xb), *wb['lr_bb'], residual=t_ab, relu=True)
            yb2 = conv(make_taps(yb), *wb['rl_bb'], relu=True)
            t_ba = conv(make_taps(yb2), *wb['rl_ba'], relu=False)
            ya2 = conv(tya, *wb['rl_aa'], residual=t_ba, relu=True)
            xa, xb = ya2, yb2
        oa_ref[...] = xa.astype(oa_ref.dtype)
        ob_ref[...] = xb.astype(ob_ref.dtype)

    return kernel


def cycle_seq_pallas(xa, xb, blocks, *, images_per_step=None):
    """Run a list of consecutive stride-1 CycleConvBlocks as ONE pallas_call.

    xa, xb: (N, Cin, H, W) NCHW f32.
    blocks: list of param dicts, name -> (grouped 3x3 weight, bias), BN folded.
    """
    N, Cin0, H, W = xa.shape
    NB = (_pick_images_per_step(N, H, W) if images_per_step is None
          else images_per_step)
    if NB < 1 or N % NB != 0:
        raise ValueError(f"images_per_step={NB} must divide batch size {N}")
    G = N // NB
    L = NB * H * W
    w_last = blocks[-1]['lr_aa'][0]
    cout_last = w_last.shape[0] * w_last.shape[1]

    # bf16, lane-dense at the HBM boundary (one relayout for the whole run).
    xa_k = _to_lane_dense(xa, NB).astype(jnp.bfloat16)
    xb_k = _to_lane_dense(xb, NB).astype(jnp.bfloat16)
    masks = _tap_masks(H, W, NB)

    args = [masks, xa_k, xb_k]
    in_specs = [
        pl.BlockSpec((9, L), lambda g: (0, 0)),                       # resident
        pl.BlockSpec((pl.Squeezed(), Cin0, L), lambda g: (g, 0, 0)),
        pl.BlockSpec((pl.Squeezed(), Cin0, L), lambda g: (g, 0, 0)),
    ]
    for p in blocks:
        for name in _CONV_ORDER:
            wk, bk = _prep_conv_weights(*p[name])
            args += [wk, bk]
            in_specs += [
                pl.BlockSpec(wk.shape, lambda g: (0, 0, 0)),          # resident
                pl.BlockSpec(bk.shape, lambda g: (0, 0)),             # resident
            ]

    out_spec = pl.BlockSpec((pl.Squeezed(), cout_last, L), lambda g: (g, 0, 0))
    ya_k, yb_k = pl.pallas_call(
        _make_seq_kernel(H, W, NB, len(blocks), _roll_is_jnp_like()),
        grid=(G,),
        in_specs=in_specs,
        out_specs=[out_spec, out_spec],
        out_shape=(jax.ShapeDtypeStruct((G, cout_last, L), jnp.bfloat16),
                   jax.ShapeDtypeStruct((G, cout_last, L), jnp.bfloat16)),
        compiler_params=pltpu.CompilerParams(
            dimension_semantics=("parallel",),   # batch chunks across TCs (v7x)
            vmem_limit_bytes=_VMEM_LIMIT),
    )(*args)
    ya = _from_lane_dense(ya_k, NB, H, W).astype(xa.dtype)
    yb = _from_lane_dense(yb_k, NB, H, W).astype(xb.dtype)
    return ya, yb


# ----------------------------------------------------------------------------
# Pure-JAX reference (matching bf16-operand / f32-accumulate precision); also
# used as the stride>1 fallback path.
# ----------------------------------------------------------------------------
def _conv3x3_ref(x, w, bias, *, stride=1, residual=None, relu=True):
    groups, cog, cig = w.shape[0], w.shape[1], w.shape[2]
    wd = w.reshape(groups * cog, cig, 3, 3)
    xq = x.astype(jnp.bfloat16).astype(jnp.float32)       # emulate bf16 MXU
    wq = wd.astype(jnp.bfloat16).astype(jnp.float32)      # operands, f32 accum
    y = jax.lax.conv_general_dilated(
        xq, wq, (stride, stride), ((1, 1), (1, 1)),
        dimension_numbers=('NCHW', 'OIHW', 'NCHW'),
        feature_group_count=groups,
        precision=jax.lax.Precision.HIGHEST)
    y = y + bias.reshape(1, -1, 1, 1)
    if residual is not None:
        y = y + residual
    if relu:
        y = jnp.maximum(y, 0.0)
    return y


def cycle_block_ref(xa, xb, p, *, stride=1):
    if stride > 1:
        nxa0 = _conv3x3_ref(xa, *p['lr_aa'], stride=stride, relu=True)
        t = _conv3x3_ref(nxa0, *p['lr_ab'], stride=1, relu=False)
        nxb0 = _conv3x3_ref(xb, *p['lr_bb'], stride=stride, residual=t, relu=True)
        nxb1 = _conv3x3_ref(xb, *p['rl_bb'], stride=stride, relu=True)
        t2 = _conv3x3_ref(nxb1, *p['rl_ba'], stride=1, relu=False)
        nxa1 = _conv3x3_ref(xa, *p['rl_aa'], stride=stride, residual=t2, relu=True)
        return nxa0 + nxa1, nxb0 + nxb1
    xa = _conv3x3_ref(xa, *p['lr_aa'], relu=True)
    t = _conv3x3_ref(xa, *p['lr_ab'], relu=False)
    xb = _conv3x3_ref(xb, *p['lr_bb'], residual=t, relu=True)
    xb = _conv3x3_ref(xb, *p['rl_bb'], relu=True)
    t2 = _conv3x3_ref(xb, *p['rl_ba'], relu=False)
    xa = _conv3x3_ref(xa, *p['rl_aa'], residual=t2, relu=True)
    return xa, xb


# ----------------------------------------------------------------------------
# Parameter construction (deterministic) + BN folding (eval mode), grouped
# ----------------------------------------------------------------------------
def _init_conv_bn_params(key, cin, cout, k, groups):
    kk = jax.random.split(key, 5)
    fan_in = (cin // groups) * k * k
    w = jax.random.normal(kk[0], (cout, cin // groups, k, k), jnp.float32) / jnp.sqrt(fan_in)
    gamma = 1.0 + 0.1 * jax.random.normal(kk[1], (cout,), jnp.float32)
    beta = 0.1 * jax.random.normal(kk[2], (cout,), jnp.float32)
    mean = 0.1 * jax.random.normal(kk[3], (cout,), jnp.float32)
    var = jnp.abs(jax.random.normal(kk[4], (cout,), jnp.float32)) + 0.5
    return w, gamma, beta, mean, var


def _fold_bn(w, gamma, beta, mean, var):
    scale = gamma / jnp.sqrt(var + EPS)
    return w * scale[:, None, None, None], beta - mean * scale


def _make_path_block_params(key, cin, cout, stride, groups, single_path):
    """Fold MultiPath / SinglePath (3x3+BN, 1x1+BN, identity-BN) into one
    grouped 3x3 conv.  Returns (w (groups, cout//g, cin//g, 3, 3), bias)."""
    k3, k1, kid = jax.random.split(key, 3)
    cig = cin // groups
    w3, g3, b3, m3, v3 = _init_conv_bn_params(k3, cin, cout, 3, groups)
    wd, bias = _fold_bn(w3, g3, b3, m3, v3)               # (cout, cig, 3, 3)
    if not single_path:
        w1, g1, b1, m1, v1 = _init_conv_bn_params(k1, cin, cout, 1, groups)
        w1f, b1f = _fold_bn(w1, g1, b1, m1, v1)
        wd = wd.at[:, :, 1, 1].add(w1f[:, :, 0, 0])
        bias = bias + b1f
        if cin == cout and stride == 1:                   # identity-BN path
            kk = jax.random.split(kid, 4)
            gid = 1.0 + 0.1 * jax.random.normal(kk[0], (cout,), jnp.float32)
            bid = 0.1 * jax.random.normal(kk[1], (cout,), jnp.float32)
            mid = 0.1 * jax.random.normal(kk[2], (cout,), jnp.float32)
            vid = jnp.abs(jax.random.normal(kk[3], (cout,), jnp.float32)) + 0.5
            sid = gid / jnp.sqrt(vid + EPS)
            rows = jnp.arange(cout)
            wd = wd.at[rows, rows % cig, 1, 1].add(sid)
            bias = bias + (bid - mid * sid)
    return wd.reshape(groups, cout // groups, cig, 3, 3), bias


def make_cycle_block_params(key, inplanes, outplanes, stride, single_path):
    cin, cout = inplanes // 2, outplanes // 2
    keys = jax.random.split(key, 6)
    return {
        'lr_aa': _make_path_block_params(keys[0], cin, cout, stride, 2, single_path),
        'lr_bb': _make_path_block_params(keys[1], cin, cout, stride, 2, single_path),
        'lr_ab': _make_path_block_params(keys[2], cout, cout, 1, 1, single_path),
        'rl_bb': _make_path_block_params(keys[3], cin, cout, stride, 2, single_path),
        'rl_aa': _make_path_block_params(keys[4], cin, cout, stride, 2, single_path),
        'rl_ba': _make_path_block_params(keys[5], cout, cout, 1, 1, single_path),
    }


# ----------------------------------------------------------------------------
# CycleConvSeq forward (one fused Pallas kernel per run of stride-1 blocks)
# ----------------------------------------------------------------------------
class CycleConvSeqPallas:
    def __init__(self, inplanes, planes, num_blocks, stride, single_path, key,
                 images_per_step=None):
        strides = [stride] + [1] * (num_blocks - 1)
        keys = jax.random.split(key, num_blocks)
        self.strides = strides
        self.images_per_step = images_per_step
        self.block_params = []
        cur = inplanes
        for i, s in enumerate(strides):
            self.block_params.append(
                make_cycle_block_params(keys[i], cur, planes, s, single_path))
            cur = planes

    def __call__(self, xa, xb):
        run = []
        for p, s in zip(self.block_params, self.strides):
            if s == 1:
                run.append(p)
                continue
            if run:
                xa, xb = cycle_seq_pallas(xa, xb, run,
                                          images_per_step=self.images_per_step)
                run = []
            # TODO(synk): stride>1 (downsampling) blocks fall back to XLA convs;
            # the fused Pallas path covers every stride==1 block.
            xa, xb = cycle_block_ref(xa, xb, p, stride=s)
        if run:
            xa, xb = cycle_seq_pallas(xa, xb, run,
                                      images_per_step=self.images_per_step)
        return xa, xb

    def reference(self, xa, xb):
        for p, s in zip(self.block_params, self.strides):
            xa, xb = cycle_block_ref(xa, xb, p, stride=s)
        return xa, xb


if __name__ == "__main__":
    key = jax.random.PRNGKey(0)
    kp, ka, kb = jax.random.split(key, 3)

    # CycleConvSeq(inplanes=8, planes=8, num_blocks=2, stride=1, single_path=False)
    inplanes, planes, num_blocks, stride, single_path = 8, 8, 2, 1, False
    N, H, W = 2, 16, 16
    xa = jax.random.normal(ka, (N, inplanes // 2, H, W), jnp.float32)  # NCHW
    xb = jax.random.normal(kb, (N, inplanes // 2, H, W), jnp.float32)  # NCHW

    model = CycleConvSeqPallas(inplanes, planes, num_blocks, stride, single_path, kp)

    # Auto NB: keeps G >= 2 grid steps (v7x dual TC) at this tiny batch.
    ya, yb = jax.block_until_ready(model(xa, xb))
    ra, rb = jax.block_until_ready(model.reference(xa, xb))

    assert ya.shape == (N, planes // 2, H, W) and yb.shape == ya.shape
    # bf16 HBM boundary + bf16 MXU operands -> slightly looser tolerance than f32.
    assert jnp.allclose(ya, ra, atol=3e-2, rtol=3e-2), float(jnp.max(jnp.abs(ya - ra)))
    assert jnp.allclose(yb, rb, atol=3e-2, rtol=3e-2), float(jnp.max(jnp.abs(yb - rb)))

    # Lane-packed path: whole batch folded onto the lane axis (one grid step).
    model.images_per_step = N
    ya2, yb2 = jax.block_until_ready(model(xa, xb))
    assert jnp.allclose(ya2, ra, atol=3e-2, rtol=3e-2), float(jnp.max(jnp.abs(ya2 - ra)))
    assert jnp.allclose(yb2, rb, atol=3e-2, rtol=3e-2), float(jnp.max(jnp.abs(yb2 - rb)))

    print("KERNEL_OK")
</pallas_src>

<mosaic_0001>
module attributes {stable_mosaic.version = 11 : i64} {
  func.func @k(%arg0: memref<8x128xf32, #tpu.memory_space<vmem>>, %arg1: memref<8x128xf32, #tpu.memory_space<vmem>>) attributes {dimension_semantics = [], scalar_prefetch = 0 : i64, scratch_operands = 0 : i64, tpu.core_type = #tpu.core_type<tc>} {
    %c0 = arith.constant 0 : index
    %c0_0 = arith.constant 0 : index
    %0 = vector.load %arg0[%c0, %c0_0] : memref<8x128xf32, #tpu.memory_space<vmem>>, vector<8x128xf32>
    %c1_i32 = arith.constant 1 : i32
    %1 = tpu.dynamic_rotate %0 by %c1_i32 dim 1 : vector<8x128xf32>, i32 -> vector<8x128xf32>
    %c0_1 = arith.constant 0 : index
    %c0_2 = arith.constant 0 : index
    %2 = vector.load %arg1[%c0_1, %c0_2] : memref<8x128xf32, #tpu.memory_space<vmem>>, vector<8x128xf32>
    tpu.vector_store %arg1[%c0_1, %c0_2], %1 {strides = array<i32>} : memref<8x128xf32, #tpu.memory_space<vmem>>, vector<8x128xf32>,
    return
  }
}

</mosaic_0001>

<bundles_post_ra>
// kernel: tpu_custom_call.1
= control target key start
LH: loop header
LB: loop body
LE: loop exit
PB: predicated region body
PF: predicated region fallthrough
CT: control target
= control target key end

     0   :  { %6 = vsyncpa [#allocation3], 0  ;;  %s106_s0 = inlined_call_operand.hbm [shape: f32[8,128], index: 0, kind: input, shape index: {}]   ;;  %s107_s1 = inlined_call_operand.hbm [shape: f32[8,128], index: 1, kind: output, shape index: {}]  }
   0x1   :  { %7 = vsyncpa [#allocation4], 0  ;;  %s87_s6 = smov [#allocation2]  }
   0x2   :  { %s14_s7 = sshll.u32 %s87_s6, 4  ;;  %s15_s7 = int_to_ptr.vmem [resolvable:$true] %s14_s7 }
   0x3   :  { %s51_s8 = scalar_lea.vmem %s15_s7, 128  ;;  %p56_p1 = scmp.lt.s32.totalorder %s15_s7, %s15_s7 }
   0x4   :  { %p52_p0 = scmp.ne.s32.totalorder %s15_s7, %s51_s8  ;;  %p57_p2 = scmp.lt.s32.totalorder %s51_s8, %s51_s8 }
   0x6   :  { %p58_p3 = por %p57_p2, %p56_p1 }
   0x8   :  { %p59_p4 = pnand %p58_p3, %p52_p0 }
   0xa   :  { %62 = shalt.err (!%p59_p4)
}
   0xb   :  { %17 = dma.hbm_to_vmem [thread:$0]  %s106_s0, 128, %s15_s7, [#allocation3]  }
   0xc   :  { %83 = dma.done.wait [#allocation3], 128  }
   0xd   :  { %84 = vsyncadd [#allocation3], 4294967168  ;;  %v21_v0 = vld [vmem:[#allocation2] sm:$0xff]  ;;  %s88_s11 = smov 1   ;;  %s89_s12 = smov [#allocation5]  }
   0xe   :  { %22 = vrot.lane.b32.xlu0 %v21_v0, %s88_s11  ;;  %s31_s13 = sshll.u32 %s89_s12, 4  ;;  %s32_s13 = int_to_ptr.vmem [resolvable:$true] %s31_s13 }
   0xf   :  { %s63_s14 = scalar_lea.vmem %s32_s13, 128  ;;  %p68_p6 = scmp.lt.s32.totalorder %s32_s13, %s32_s13 }
  0x10   :  { %p64_p5 = scmp.ne.s32.totalorder %s32_s13, %s63_s14  ;;  %p69_p7 = scmp.lt.s32.totalorder %s63_s14, %s63_s14 }
  0x12   :  { %p70_p8 = por %p69_p7, %p68_p6 }
  0x14   :  { %p71_p9 = pnand %p70_p8, %p64_p5 }
  0x80   :  { %v23_v1 = vpop.permute.xlu0 %22 }
  0x81   :  { %24 = vst [vmem:[#allocation5] sm:$0xff] %v23_v1 }
  0x82   :  { %74 = shalt.err (!%p71_p9)
}
  0x83   :  { %34 = dma.vmem_to_hbm [thread:$0]  %s32_s13, 128, %s107_s1, [#allocation4]  }
  0x84   :  { %85 = dma.done.wait [#allocation4], 128  }
  0x85   :  { %86 = vsyncadd [#allocation4], 4294967168 }
  0x86   :  { %38 = vsyncpa [#allocation3], 1 }
  0x87   :  { %39 = vsyncpa [#allocation4], 1 }

</bundles_post_ra>
